<compile_context>
chip_gen: v6e
topology: v6e:2x2x1
jax: 0.10.0
libtpu: 0.0.40
codegen_flags: <defaults>
</compile_context>

<pallas_src>
import functools
import math

import jax
import jax.numpy as jnp
from jax import lax
from jax.experimental import pallas as pl
from jax.experimental.pallas import tpu as pltpu

_LN_EPS = 1e-5        # PyTorch nn.LayerNorm default
_NEG_BIG = -1e30      # finite "-inf" for masked scores (avoids inf-inf NaNs)


def _round_up(n, m):
    return (n + m - 1) // m * m


def _layer_norm_f32(t, g, b):
    mu = jnp.mean(t, axis=-1, keepdims=True)
    var = jnp.mean(jnp.square(t - mu), axis=-1, keepdims=True)
    return (t - mu) * lax.rsqrt(var + _LN_EPS) * g + b


# --------------------------------------------------------------------------- #
# Kernel 1: LayerNorm(y) -> K / V projection (full-width, lane-dense output).
# --------------------------------------------------------------------------- #
def _kv_proj_kernel(y_ref, g_ref, b_ref, wk_ref, wv_ref, k_ref, v_ref):
    y = y_ref[0].astype(jnp.float32)                    # (tm, D)
    g = g_ref[...].astype(jnp.float32)                  # (1, D)
    b = b_ref[...].astype(jnp.float32)
    yn = _layer_norm_f32(y, g, b).astype(wk_ref.dtype)  # MXU operand dtype

    # Two full-width (D, inner) MXU matmuls; (tm, inner) lane-dense stores.
    k_ref[0] = jnp.dot(yn, wk_ref[...],
                       preferred_element_type=jnp.float32).astype(k_ref.dtype)
    v_ref[0] = jnp.dot(yn, wv_ref[...],
                       preferred_element_type=jnp.float32).astype(v_ref.dtype)


# --------------------------------------------------------------------------- #
# Kernel 2: LayerNorm(x) -> Q -> flash-style attention over key tiles -> Wo+bo.
# --------------------------------------------------------------------------- #
def _attn_kernel(x_ref, g_ref, b_ref, wq_ref, k_ref, v_ref, wo_ref, bo_ref,
                 o_ref, q_scr, m_scr, l_scr, acc_scr,
                 *, heads, dh, m_valid, k_tile):
    mi = pl.program_id(2)
    n_mt = pl.num_programs(2)
    tq = q_scr.shape[0]

    # ---- first key tile of this (batch, q-tile): LN(x) + full-width Q proj ----
    @pl.when(mi == 0)
    def _():
        x = x_ref[0].astype(jnp.float32)                # (tq, D)
        g = g_ref[...].astype(jnp.float32)
        b = b_ref[...].astype(jnp.float32)
        xn = _layer_norm_f32(x, g, b).astype(wq_ref.dtype)
        # Single (tq, D) @ (D, inner) MXU matmul; softmax scale pre-folded in Wq.
        q = jnp.dot(xn, wq_ref[...], preferred_element_type=jnp.float32)
        q_scr[...] = q.astype(q_scr.dtype)
        m_scr[...] = jnp.full(m_scr.shape, _NEG_BIG, m_scr.dtype)
        l_scr[...] = jnp.zeros(l_scr.shape, l_scr.dtype)
        acc_scr[...] = jnp.zeros(acc_scr.shape, acc_scr.dtype)

    k_all = k_ref[0]                                    # (tm, inner), MXU dtype
    v_all = v_ref[0]
    q_all = q_scr[...]

    mask_needed = (m_valid % k_tile) != 0               # static (Python) bool
    if mask_needed:
        col = mi * k_tile + lax.broadcasted_iota(jnp.int32, (tq, k_tile), 1)
        key_mask = col < m_valid

    # Online softmax per head.  Per-head running state lives in VMEM scratch so
    # the static unroll over heads does not accumulate live ranges.
    for h in range(heads):
        hs = slice(h * dh, (h + 1) * dh)
        qh = q_all[:, hs]                               # (tq, dh)  MXU dtype
        kh = k_all[:, hs]                               # (tm, dh)
        vh = v_all[:, hs]                               # (tm, dh)

        # q @ k^T (contract head dim) -> (tq, tm); native-dtype operands, f32 acc.
        s = lax.dot_general(qh, kh, (((1,), (1,)), ((), ())),
                            preferred_element_type=jnp.float32)
        if mask_needed:
            s = jnp.where(key_mask, s, _NEG_BIG)

        m_prev = m_scr[:, h:h + 1]
        m_new = jnp.maximum(m_prev, jnp.max(s, axis=-1, keepdims=True))
        alpha = jnp.exp(m_prev - m_new)
        p = jnp.exp(s - m_new)                          # unnormalized probs
        l_scr[:, h:h + 1] = alpha * l_scr[:, h:h + 1] + jnp.sum(
            p, axis=-1, keepdims=True)
        pv = jnp.dot(p.astype(vh.dtype), vh,
                     preferred_element_type=jnp.float32)            # (tq, dh)
        acc_scr[:, hs] = alpha * acc_scr[:, hs] + pv
        m_scr[:, h:h + 1] = m_new

    # ---- last key tile: deferred normalization + single output projection ----
    @pl.when(mi == n_mt - 1)
    def _():
        inv_l = pl.reciprocal(l_scr[...], approx=True)  # (tq, heads), EUP
        for h in range(heads):
            hs = slice(h * dh, (h + 1) * dh)
            acc_scr[:, hs] = acc_scr[:, hs] * inv_l[:, h:h + 1]
        o_all = acc_scr[...].astype(wo_ref.dtype)       # (tq, inner)
        # Single full-K (inner) output-projection matmul (== concat_heads @ Wo).
        out = jnp.dot(o_all, wo_ref[...], preferred_element_type=jnp.float32)
        o_ref[0] = (out + bo_ref[...].astype(jnp.float32)).astype(o_ref.dtype)


# --------------------------------------------------------------------------- #
# Wrapper
# --------------------------------------------------------------------------- #
def cross_attention_pallas(x, y, params, *, heads, q_tile=256, k_tile=512):
    """x: (B, N, D) queries; y: (B, M, D) keys/values. Returns (B, N, D).

    Tile defaults (q_tile=256, k_tile=512) fit all of v5e/v6e/v7x under the
    default scoped VMEM.  On v6e, q_tile=512 amortizes per-step overhead better;
    on v7x (64 MiB VMEM) keep q_tile <= 256.
    """
    gamma, beta, wq, wkv, wo, bo = params
    B, N, D = x.shape
    By, M, Dy = y.shape
    assert By == B and Dy == D
    inner = wq.shape[1]
    assert inner % heads == 0
    dh = inner // heads
    scale = dh ** (-0.5)

    gamma = jnp.reshape(gamma, (1, D))
    beta = jnp.reshape(beta, (1, D))
    bo = jnp.reshape(bo, (1, D))

    # MXU operands in the weights' native dtype (bf16-ready), f32 accumulation.
    w_dtype = wq.dtype
    # Fold the softmax scale into Wq (saves two (tq, tm) VPU multiplies per head
    # per key tile).  Split to_kv once.
    # TODO(synk): pre-scale / pre-split at parameter-load time to avoid
    #             re-materializing the weights in HBM on every forward.
    wq_scaled = (wq.astype(jnp.float32) * scale).astype(w_dtype)
    wk = wkv[:, :inner]
    wv = wkv[:, inner:]

    # Sublane packing: 8 rows for 4-byte dtypes, 16 for 2-byte (bf16).
    sub = 8 if jnp.dtype(x.dtype).itemsize >= 4 else 16

    tm = _round_up(min(k_tile, _round_up(M, sub)), sub)       # key tile
    M_pad = _round_up(M, tm)
    n_mt = M_pad // tm
    tq = _round_up(min(q_tile, _round_up(N, sub)), sub)       # query tile
    N_pad = _round_up(N, tq)
    n_qt = N_pad // tq

    yp = y if M_pad == M else jnp.pad(y, ((0, 0), (0, M_pad - M), (0, 0)))
    xp = x if N_pad == N else jnp.pad(x, ((0, 0), (0, N_pad - N), (0, 0)))

    esz = jnp.dtype(x.dtype).itemsize
    wsz = jnp.dtype(w_dtype).itemsize

    def _vmem_limit(est):
        # Real per-step footprint * headroom, clamped to [32 MiB, 64 MiB].
        return int(min(64 * 2 ** 20, max(32 * 2 ** 20, 2 * est)))

    # ---- Stage 1: LayerNorm(y) + K/V projection, tiled over (B, key tiles) ---
    est1 = (2 * tm * D * esz                        # y tile (double-buffered)
            + 2 * D * esz + 2 * D * inner * wsz     # gamma/beta + Wk/Wv (1 buf)
            + 2 * 2 * tm * inner * esz              # K, V tiles (double-buffered)
            + 4 * tm * (D + 2 * inner))             # f32 intermediates
    k, v = pl.pallas_call(
        _kv_proj_kernel,
        out_shape=(jax.ShapeDtypeStruct((B, M_pad, inner), x.dtype),
                   jax.ShapeDtypeStruct((B, M_pad, inner), x.dtype)),
        grid_spec=pltpu.PrefetchScalarGridSpec(
            num_scalar_prefetch=0,
            grid=(B, n_mt),
            in_specs=[
                pl.BlockSpec((1, tm, D), lambda b, m: (b, m, 0)),          # y
                pl.BlockSpec((1, D), lambda b, m: (0, 0),
                             pipeline_mode=pl.Buffered(1)),                # gamma
                pl.BlockSpec((1, D), lambda b, m: (0, 0),
                             pipeline_mode=pl.Buffered(1)),                # beta
                pl.BlockSpec((D, inner), lambda b, m: (0, 0),
                             pipeline_mode=pl.Buffered(1)),                # Wk
                pl.BlockSpec((D, inner), lambda b, m: (0, 0),
                             pipeline_mode=pl.Buffered(1)),                # Wv
            ],
            out_specs=(pl.BlockSpec((1, tm, inner), lambda b, m: (b, m, 0)),
                       pl.BlockSpec((1, tm, inner), lambda b, m: (b, m, 0))),
        ),
        compiler_params=pltpu.CompilerParams(
            dimension_semantics=("parallel", "parallel"),
            vmem_limit_bytes=_vmem_limit(est1)),
    )(yp, gamma, beta, wk, wv)

    # ---- Stage 2: LN(x) + Q + flash attention over key tiles + output proj ---
    est2 = (2 * tq * D * esz                        # x tile
            + 3 * D * esz + 2 * D * inner * wsz     # gamma/beta/bo + Wq/Wo (1 buf)
            + 2 * 2 * tm * inner * esz              # K, V tiles (double-buffered)
            + 2 * tq * D * esz                      # output tile
            + tq * inner * (wsz + 4)                # q scratch + f32 acc scratch
            + 8 * tq * heads                        # running max / sum
            + 2 * 4 * tq * tm)                      # f32 score working set
    kernel = functools.partial(_attn_kernel, heads=heads, dh=dh,
                               m_valid=M, k_tile=tm)
    out = pl.pallas_call(
        kernel,
        out_shape=jax.ShapeDtypeStruct((B, N_pad, D), x.dtype),
        grid_spec=pltpu.PrefetchScalarGridSpec(
            num_scalar_prefetch=0,
            grid=(B, n_qt, n_mt),
            in_specs=[
                pl.BlockSpec((1, tq, D), lambda b, q, m: (b, q, 0)),       # x
                pl.BlockSpec((1, D), lambda b, q, m: (0, 0),
                             pipeline_mode=pl.Buffered(1)),                # gamma
                pl.BlockSpec((1, D), lambda b, q, m: (0, 0),
                             pipeline_mode=pl.Buffered(1)),                # beta
                pl.BlockSpec((D, inner), lambda b, q, m: (0, 0),
                             pipeline_mode=pl.Buffered(1)),                # Wq (scaled)
                pl.BlockSpec((1, tm, inner), lambda b, q, m: (b, m, 0)),   # K
                pl.BlockSpec((1, tm, inner), lambda b, q, m: (b, m, 0)),   # V
                pl.BlockSpec((inner, D), lambda b, q, m: (0, 0),
                             pipeline_mode=pl.Buffered(1)),                # Wo
                pl.BlockSpec((1, D), lambda b, q, m: (0, 0),
                             pipeline_mode=pl.Buffered(1)),                # bo
            ],
            out_specs=pl.BlockSpec((1, tq, D), lambda b, q, m: (b, q, 0)),
            scratch_shapes=[
                pltpu.VMEM((tq, inner), w_dtype),       # q (scale folded in)
                pltpu.VMEM((tq, heads), jnp.float32),   # running max per head
                pltpu.VMEM((tq, heads), jnp.float32),   # running sum per head
                pltpu.VMEM((tq, inner), jnp.float32),   # per-head output acc
            ],
        ),
        compiler_params=pltpu.CompilerParams(
            dimension_semantics=("parallel", "parallel", "arbitrary"),
            vmem_limit_bytes=_vmem_limit(est2)),
    )(xp, gamma, beta, wq_scaled, k, v, wo, bo)

    return out if N_pad == N else out[:, :N, :]


# --------------------------------------------------------------------------- #
# Parameter init (mirrors PyTorch module defaults) and pure-JAX reference.
# --------------------------------------------------------------------------- #
def init_params(key, dim, heads, dim_head, dtype=jnp.float32):
    inner = heads * dim_head
    k1, k2, k3, k4 = jax.random.split(key, 4)
    gamma = jnp.ones((1, dim), dtype)          # LayerNorm weight
    beta = jnp.zeros((1, dim), dtype)          # LayerNorm bias
    lim = 1.0 / math.sqrt(dim)
    wq = jax.random.uniform(k1, (dim, inner), dtype, -lim, lim)       # to_q
    wkv = jax.random.uniform(k2, (dim, 2 * inner), dtype, -lim, lim)  # to_kv
    limo = 1.0 / math.sqrt(inner)
    wo = jax.random.uniform(k3, (inner, dim), dtype, -limo, limo)     # to_out W
    bo = jax.random.uniform(k4, (1, dim), dtype, -limo, limo)         # to_out b
    return (gamma, beta, wq, wkv, wo, bo)


def cross_attention_ref(x, y, params, *, heads):
    gamma, beta, wq, wkv, wo, bo = params
    B, N, D = x.shape
    M = y.shape[1]
    inner = wq.shape[1]
    dh = inner // heads
    scale = dh ** (-0.5)

    def ln(t):
        t = t.astype(jnp.float32)
        mu = jnp.mean(t, axis=-1, keepdims=True)
        var = jnp.mean(jnp.square(t - mu), axis=-1, keepdims=True)
        return (t - mu) * lax.rsqrt(var + _LN_EPS) * gamma + beta

    xn, yn = ln(x), ln(y)
    q = xn @ wq
    kv = yn @ wkv
    k, v = kv[..., :inner], kv[..., inner:]
    q = q.reshape(B, N, heads, dh).transpose(0, 2, 1, 3)
    k = k.reshape(B, M, heads, dh).transpose(0, 2, 1, 3)
    v = v.reshape(B, M, heads, dh).transpose(0, 2, 1, 3)
    dots = jnp.einsum("bhnd,bhmd->bhnm", q, k) * scale
    dots = dots - jnp.max(dots, axis=-1, keepdims=True)
    p = jnp.exp(dots)
    attn = p / jnp.sum(p, axis=-1, keepdims=True)
    o = jnp.einsum("bhnm,bhmd->bhnd", attn, v)
    o = o.transpose(0, 2, 1, 3).reshape(B, N, inner)
    return (o @ wo + bo).astype(x.dtype)


if __name__ == "__main__":
    key = jax.random.PRNGKey(0)
    kx, ky, kp = jax.random.split(key, 3)

    batch, n_q, n_kv, dim, heads, dim_head = 2, 8, 16, 32, 4, 16
    x = jax.random.normal(kx, (batch, n_q, dim), jnp.float32)
    y = jax.random.normal(ky, (batch, n_kv, dim), jnp.float32)
    params = init_params(kp, dim, heads, dim_head)

    out = jax.block_until_ready(cross_attention_pallas(x, y, params, heads=heads))
    ref = cross_attention_ref(x, y, params, heads=heads)
    assert out.shape == (batch, n_q, dim)
    # Tolerance allows for the approximate EUP reciprocal in the softmax denom.
    assert jnp.allclose(out, ref, atol=5e-3, rtol=5e-3), "mismatch vs reference"

    # bf16 smoke test: exercises the weight-native (bf16) MXU-operand path.
    xb, yb = x.astype(jnp.bfloat16), y.astype(jnp.bfloat16)
    pb = tuple(p.astype(jnp.bfloat16) for p in params)
    outb = jax.block_until_ready(cross_attention_pallas(xb, yb, pb, heads=heads))
    assert outb.shape == (batch, n_q, dim)
    assert bool(jnp.isfinite(outb.astype(jnp.float32)).all())

    print("KERNEL_OK")
</pallas_src>

<mosaic_0001>
module attributes {stable_mosaic.version = 11 : i64} {
  func.func @_kv_proj_kernel(%arg0: i32, %arg1: i32, %arg2: memref<1x16x32xf32, #tpu.memory_space<vmem>>, %arg3: memref<1x32xf32, #tpu.memory_space<vmem>>, %arg4: memref<1x32xf32, #tpu.memory_space<vmem>>, %arg5: memref<32x64xf32, #tpu.memory_space<vmem>>, %arg6: memref<32x64xf32, #tpu.memory_space<vmem>>, %arg7: memref<1x16x64xf32, #tpu.memory_space<vmem>>, %arg8: memref<1x16x64xf32, #tpu.memory_space<vmem>>) attributes {dimension_semantics = [#tpu.dimension_semantics<parallel>, #tpu.dimension_semantics<parallel>], iteration_bounds = array<i64: 2, 1>, scalar_prefetch = 0 : i64, scratch_operands = 0 : i64, tpu.core_type = #tpu.core_type<tc>, window_params = [{transform_indices = @transform_0, window_bounds = array<i64: 1, 16, 32>}, {pipeline_mode = #tpu.pipeline_mode<synchronous>, transform_indices = @transform_1, window_bounds = array<i64: 1, 32>}, {pipeline_mode = #tpu.pipeline_mode<synchronous>, transform_indices = @transform_2, window_bounds = array<i64: 1, 32>}, {pipeline_mode = #tpu.pipeline_mode<synchronous>, transform_indices = @transform_3, window_bounds = array<i64: 32, 64>}, {pipeline_mode = #tpu.pipeline_mode<synchronous>, transform_indices = @transform_4, window_bounds = array<i64: 32, 64>}, {transform_indices = @transform_5, window_bounds = array<i64: 1, 16, 64>}, {transform_indices = @transform_6, window_bounds = array<i64: 1, 16, 64>}]} {
    %c0 = arith.constant 0 : index
    %c0_0 = arith.constant 0 : index
    %c0_1 = arith.constant 0 : index
    %0 = vector.load %arg2[%c0, %c0_0, %c0_1] : memref<1x16x32xf32, #tpu.memory_space<vmem>>, vector<1x16x32xf32>
    %1 = vector.shape_cast %0 : vector<1x16x32xf32> to vector<16x32xf32>
    %c0_2 = arith.constant 0 : index
    %c0_3 = arith.constant 0 : index
    %2 = vector.load %arg3[%c0_2, %c0_3] : memref<1x32xf32, #tpu.memory_space<vmem>>, vector<1x32xf32>
    %c0_4 = arith.constant 0 : index
    %c0_5 = arith.constant 0 : index
    %3 = vector.load %arg4[%c0_4, %c0_5] : memref<1x32xf32, #tpu.memory_space<vmem>>, vector<1x32xf32>
    %cst = arith.constant dense<0.000000e+00> : vector<16xf32>
    %4 = vector.multi_reduction <add>, %1, %cst [1] : vector<16x32xf32> to vector<16xf32>
    %5 = vector.shape_cast %4 : vector<16xf32> to vector<16x1xf32>
    %cst_6 = arith.constant 3.200000e+01 : f32
    %6 = vector.broadcast %cst_6 : f32 to vector<16x1xf32>
    %7 = arith.divf %5, %6 : vector<16x1xf32>
    %8 = vector.broadcast %7 : vector<16x1xf32> to vector<16x32xf32>
    %9 = arith.subf %1, %8 : vector<16x32xf32>
    %10 = arith.mulf %9, %9 : vector<16x32xf32>
    %cst_7 = arith.constant dense<0.000000e+00> : vector<16xf32>
    %11 = vector.multi_reduction <add>, %10, %cst_7 [1] : vector<16x32xf32> to vector<16xf32>
    %12 = vector.shape_cast %11 : vector<16xf32> to vector<16x1xf32>
    %cst_8 = arith.constant 3.200000e+01 : f32
    %13 = vector.broadcast %cst_8 : f32 to vector<16x1xf32>
    %14 = arith.divf %12, %13 : vector<16x1xf32>
    %15 = vector.broadcast %7 : vector<16x1xf32> to vector<16x32xf32>
    %16 = arith.subf %1, %15 : vector<16x32xf32>
    %cst_9 = arith.constant 9.99999974E-6 : f32
    %17 = vector.broadcast %cst_9 : f32 to vector<16x1xf32>
    %18 = arith.addf %14, %17 : vector<16x1xf32>
    %19 = math.rsqrt %18 : vector<16x1xf32>
    %20 = vector.broadcast %19 : vector<16x1xf32> to vector<16x32xf32>
    %21 = arith.mulf %16, %20 : vector<16x32xf32>
    %22 = vector.broadcast %2 : vector<1x32xf32> to vector<16x32xf32>
    %23 = arith.mulf %21, %22 : vector<16x32xf32>
    %24 = vector.broadcast %3 : vector<1x32xf32> to vector<16x32xf32>
    %25 = arith.addf %23, %24 : vector<16x32xf32>
    %c0_10 = arith.constant 0 : index
    %c0_11 = arith.constant 0 : index
    %26 = vector.load %arg5[%c0_10, %c0_11] : memref<32x64xf32, #tpu.memory_space<vmem>>, vector<32x64xf32>
    %cst_12 = arith.constant dense<0.000000e+00> : vector<16x64xf32>
    %27 = tpu.matmul %25, %26, %cst_12 {dimension_numbers = #tpu.dot_dimension_numbers<[1], [0], [0], [1], [0, 0, 1, 1], [], []>} : vector<16x32xf32>, vector<32x64xf32>, vector<16x64xf32> -> vector<16x64xf32>
    %c0_13 = arith.constant 0 : index
    %c0_14 = arith.constant 0 : index
    %c0_15 = arith.constant 0 : index
    %28 = vector.load %arg7[%c0_13, %c0_14, %c0_15] : memref<1x16x64xf32, #tpu.memory_space<vmem>>, vector<1x16x64xf32>
    %29 = vector.shape_cast %28 : vector<1x16x64xf32> to vector<16x64xf32>
    %30 = vector.shape_cast %27 : vector<16x64xf32> to vector<1x16x64xf32>
    tpu.vector_store %arg7[%c0_13, %c0_14, %c0_15], %30 {strides = array<i32>} : memref<1x16x64xf32, #tpu.memory_space<vmem>>, vector<1x16x64xf32>,
    %c0_16 = arith.constant 0 : index
    %c0_17 = arith.constant 0 : index
    %31 = vector.load %arg6[%c0_16, %c0_17] : memref<32x64xf32, #tpu.memory_space<vmem>>, vector<32x64xf32>
    %cst_18 = arith.constant dense<0.000000e+00> : vector<16x64xf32>
    %32 = tpu.matmul %25, %31, %cst_18 {dimension_numbers = #tpu.dot_dimension_numbers<[1], [0], [0], [1], [0, 0, 1, 1], [], []>} : vector<16x32xf32>, vector<32x64xf32>, vector<16x64xf32> -> vector<16x64xf32>
    %c0_19 = arith.constant 0 : index
    %c0_20 = arith.constant 0 : index
    %c0_21 = arith.constant 0 : index
    %33 = vector.load %arg8[%c0_19, %c0_20, %c0_21] : memref<1x16x64xf32, #tpu.memory_space<vmem>>, vector<1x16x64xf32>
    %34 = vector.shape_cast %33 : vector<1x16x64xf32> to vector<16x64xf32>
    %35 = vector.shape_cast %32 : vector<16x64xf32> to vector<1x16x64xf32>
    tpu.vector_store %arg8[%c0_19, %c0_20, %c0_21], %35 {strides = array<i32>} : memref<1x16x64xf32, #tpu.memory_space<vmem>>, vector<1x16x64xf32>,
    return
  }
  func.func @transform_0(%arg0: i32, %arg1: i32) -> (i32, i32, i32) {
    %c0_i32 = arith.constant 0 : i32
    %c0_i32_0 = arith.constant 0 : i32
    return %arg0, %arg1, %c0_i32 : i32, i32, i32
  }
  func.func @transform_1(%arg0: i32, %arg1: i32) -> (i32, i32) {
    %c0_i32 = arith.constant 0 : i32
    %c0_i32_0 = arith.constant 0 : i32
    %c0_i32_1 = arith.constant 0 : i32
    return %c0_i32, %c0_i32_0 : i32, i32
  }
  func.func @transform_2(%arg0: i32, %arg1: i32) -> (i32, i32) {
    %c0_i32 = arith.constant 0 : i32
    %c0_i32_0 = arith.constant 0 : i32
    %c0_i32_1 = arith.constant 0 : i32
    return %c0_i32, %c0_i32_0 : i32, i32
  }
  func.func @transform_3(%arg0: i32, %arg1: i32) -> (i32, i32) {
    %c0_i32 = arith.constant 0 : i32
    %c0_i32_0 = arith.constant 0 : i32
    %c0_i32_1 = arith.constant 0 : i32
    return %c0_i32, %c0_i32_0 : i32, i32
  }
  func.func @transform_4(%arg0: i32, %arg1: i32) -> (i32, i32) {
    %c0_i32 = arith.constant 0 : i32
    %c0_i32_0 = arith.constant 0 : i32
    %c0_i32_1 = arith.constant 0 : i32
    return %c0_i32, %c0_i32_0 : i32, i32
  }
  func.func @transform_5(%arg0: i32, %arg1: i32) -> (i32, i32, i32) {
    %c0_i32 = arith.constant 0 : i32
    %c0_i32_0 = arith.constant 0 : i32
    return %arg0, %arg1, %c0_i32 : i32, i32, i32
  }
  func.func @transform_6(%arg0: i32, %arg1: i32) -> (i32, i32, i32) {
    %c0_i32 = arith.constant 0 : i32
    %c0_i32_0 = arith.constant 0 : i32
    return %arg0, %arg1, %c0_i32 : i32, i32, i32
  }
}

</mosaic_0001>

<bundles_post_ra>
// kernel: tpu_custom_call.1
= control target key start
LH: loop header
LB: loop body
LE: loop exit
PB: predicated region body
PF: predicated region fallthrough
CT: control target
= control target key end

     0   :  { %s1382_s0 = inlined_call_operand.hbm [shape: f32[2,16,32], index: 0, kind: input, shape index: {}]   ;;  %s1383_s1 = inlined_call_operand.vmem [shape: f32[1,32], index: 1, kind: input, shape index: {}]   ;;  %s1384_s2 = inlined_call_operand.vmem [shape: f32[1,32], index: 2, kind: input, shape index: {}]   ;;  %s1385_s3 = inlined_call_operand.hbm [shape: f32[32,64], index: 3, kind: input, shape index: {}]   ;;  %s1386_s4 = inlined_call_operand.hbm [shape: f32[32,64], index: 4, kind: input, shape index: {}]   ;;  %s1387_s5 = inlined_call_operand.hbm [shape: f32[2,16,64], index: 5, kind: output, shape index: {0}]   ;;  %s1388_s6 = inlined_call_operand.hbm [shape: f32[2,16,64], index: 6, kind: output, shape index: {1}]  }
   0x1   :  { %1391 = sst [smem:[#allocation15_spill]] %s1385_s3 }
   0x2   :  { %1392 = sst [smem:[#allocation16_spill]] %s1386_s4 }
   0x3   :  { %12 = vsyncpa [#allocation3], 0 }
   0x4   :  { %14 = vsyncpa [#allocation3 + $0x1], 0 }
   0x5   :  { %15 = vsyncpa [#allocation6], 0 }
   0x6   :  { %16 = vsyncpa [#allocation4], 0 }
   0x7   :  { %18 = vsyncpa [#allocation4 + $0x1], 0 }
   0x8   :  { %19 = vsyncpa [#allocation10], 0 }
   0x9   :  { %21 = vsyncpa [#allocation10 + $0x1], 0  ;;  %s1132_s21 = smov 0   ;;  %s1134_s22 = smov 0  }
   0xa   :  { %s1136_s23 = smov 0   ;;  %s1138_s24 = smov 0  }
   0xb   :  { %s1140_s25 = smov 0   ;;  %s1142_s26 = smov 0  }
   0xc LB: > { %s730_s27 = sadd.s32 4294967295, %s1086_s26   ;;  %s731_s28 = sadd.s32 4294967294, %s1086_s26   ;;  %s1086_s26 = sphi %s1142_s26, %s27_s26   ;;  %s1082_s25 = sphi %s1140_s25, %s1411_s25   ;;  %s1078_s24 = sphi %s1138_s24, %s1410_s24   ;;  %s1074_s23 = sphi %s1136_s23, %s1409_s23   ;;  %s1070_s22 = sphi %s1134_s22, %s1408_s22   ;;  %s1066_s21 = sphi %s1132_s21, %s1407_s21  }
   0xd   : > { %p61_p0 = scmp.ne.s32.totalorder %s1070_s22, %s1066_s21  ;;  %p1166_p1 = scmp.eq.s32.totalorder %s730_s27, 0 }
   0xe   : > { %p1170_p2 = scmp.eq.s32.totalorder %s730_s27, 1  ;;  %p177_p3 = scmp.eq.s32.totalorder %s731_s28, 1 }
   0xf   : > { %p1176_p4 = por %p1166_p1, %p61_p0  ;;  %p732_p5 = scmp.ge.s32.totalorder %s1086_s26, 1 }
  0x10   : > { %p1181_p6 = por %p177_p3, %p61_p0  ;;  %p212_p7 = scmp.lt.s32.totalorder %s1086_s26, 3 }
  0x11   : > { %s1088_s10 = smov [#allocation5]   ;;  %s1089_s13 = smov [#allocation7]  }
  0x12   : > { %s1396_s8 = scalar_select %p1181_p6, 1, 0 }
  0x13   : > { %p1186_p8 = pnand %p732_p5, %p212_p7  ;;  %s230_s11 = sshll.u32 %s1088_s10, 4  ;;  %s231_s11 = int_to_ptr.vmem [resolvable:$true] %s230_s11 }
  0x14   : > { %s243_s14 = sshll.u32 %s1089_s13, 4  ;;  %s903_s15 = scalar_lea.vmem %s231_s11, 512  ;;  %s244_s14 = int_to_ptr.vmem [resolvable:$true] %s243_s14 }
  0x15   : > { %p810_p9 = pneg %p1186_p8  ;;  %p904_p13 = scmp.ne.s32.totalorder %s231_s11, %s903_s15 }
  0x16   : > { %p911_p5 = scmp.lt.s32.totalorder %s231_s11, %s231_s11  ;;  %p912_p7 = scmp.lt.s32.totalorder %s903_s15, %s903_s15 }
  0x17   : > { %p1195_p11 = pnand %p810_p9, %p1166_p1 }
  0x18   : > { %p913_p10 = por %p912_p7, %p911_p5 }
  0x19   : > { %p894_p12 = pneg %p1195_p11 }
  0x1b   : > { %p906_p0 = pnand %p904_p13, %p894_p12 }
  0x1d   : > { %p907_p3 = pneg %p906_p0 }
  0x1f   : > { %p914_p9 = pnand %p913_p10, %p907_p3 }
  0x21   : > { %917 = shalt.err (!%p914_p9)
}
  0x22   : > { %s1389_s16 = smov 128   ;;  %s1390_s17 = smov 8  }
  0x23   : > { %s1399_s3 = sld [smem:[#allocation15_spill]]  ;;  %s929_s20 = scalar_lea.vmem %s244_s14, 512 }
  0x24   : > { %p930_p13 = scmp.ne.s32.totalorder %s244_s14, %s929_s20  ;;  %p937_p10 = scmp.lt.s32.totalorder %s244_s14, %s244_s14 }
  0x25   : > { %p938_p3 = scmp.lt.s32.totalorder %s929_s20, %s929_s20 }
  0x26   : > { %p932_p0 = pnand %p930_p13, %p894_p12 }
  0x27   : > { %p939_p7 = por %p938_p3, %p937_p10 }
  0x28   : > { %p933_p5 = pneg %p932_p0 }
  0x29   : > { %813 = dma.hbm_to_vmem [thread:$0]  (!%p1195_p11), %s1399_s3, 512, %s231_s11, [#allocation6], %s1389_s16, %s1389_s16, %s1390_s17  }
  0x2a   : > { %p940_p9 = pnand %p939_p7, %p933_p5 }
  0x2c   : > { %943 = shalt.err (!%p940_p9)
}
  0x2d   : > { %s1400_s4 = sld [smem:[#allocation16_spill]]  ;;  %s39_s10 = sadd.s32 1, %s1082_s25 }
  0x2e   : > { %s48_s11 = sadd.s32 1, %s1074_s23  ;;  %p41_p12 = scmp.ge.s32.totalorder %s39_s10, 2 }
  0x2f   : > { %p55_p13 = scmp.ne.s32.totalorder %s1074_s23, %s1070_s22  ;;  %p56_p0 = scmp.eq.s32.totalorder %s1086_s26, 0 }
  0x30   : > { %p830_p5 = scmp.lt.s32.totalorder %s1086_s26, 2  ;;  %s1413_s10 = smov (%p41_p12, %s39_s10), 0 }
  0x31   : > { %p57_p10 = por %p56_p0, %p55_p13  ;;  %p1233_p3 = por %p1170_p2, %p55_p13 }
  0x32   : > { %s43_s13 = ssub.s32 %s1082_s25, %s1413_s10  ;;  %s257_s15 = sand.u32 1, %s1074_s23  }
  0x33   : > { %816 = dma.hbm_to_vmem [thread:$0]  (!%p1195_p11), %s1400_s4, 512, %s244_s14, [#allocation6], %s1389_s16, %s1389_s16, %s1390_s17  }
  0x34   : > { %p46_p7 = scmp.eq.s32.totalorder %s43_s13, 0  ;;  %s736_s14 = sshll.u32 %s257_s15, 4 }
  0x35   : > { %s759_s18 = sshll.u32 %s1082_s25, 8  ;;  %s261_s16 = scalar_lea.vmem [#allocation2], %s736_s14 }
  0x36   : > { %s1242_s19 = scalar_select %p46_p7, %s1074_s23, %s48_s11  }
  0x37   : > { %s269_s28 = scalar_lea.hbm %s1382_s0, %s759_s18  ;;  %s270_s17 = sshll.u32 %s261_s16, 4  ;;  %s271_s17 = int_to_ptr.vmem [resolvable:$true] %s270_s17 }
  0x38   : > { %p1249_p11 = pnand %p830_p5, %p57_p10  ;;  %s258_s3 = scalar_lea.sflag [#allocation3], %s257_s15 }
  0x39   : > { %s957_s13 = scalar_lea.vmem %s271_s17, 256  ;;  %s1092_s11 = smov [#allocation2]  }
  0x3a   : > { %p946_p2 = pneg %p1249_p11  ;;  %p958_p9 = scmp.ne.s32.totalorder %s271_s17, %s957_s13 }
  0x3b   : > { %s962_s4 = sshll.u32 %s1092_s11, 4  ;;  %s963_s4 = int_to_ptr.vmem [resolvable:$false] %s962_s4 }
  0x3c   : > { %p960_p12 = pnand %p958_p9, %p946_p2  ;;  %s964_s18 = scalar_lea.vmem %s963_s4, 512 }
  0x3d   : > { %p965_p0 = scmp.lt.s32.totalorder %s271_s17, %s963_s4  ;;  %p966_p7 = scmp.lt.s32.totalorder %s964_s18, %s957_s13 }
  0x3e   : > { %p961_p13 = pneg %p960_p12 }
  0x3f   : > { %p967_p6 = por %p966_p7, %p965_p0 }
  0x41   : > { %p968_p5 = pnand %p967_p6, %p961_p13 }
  0x43   : > { %971 = shalt.err (!%p968_p5)
}
  0x44   : > { %s1403_s16 = smov 8   ;;  %s1404_s14 = smov 128  }
  0x45   : > { %820 = dma.hbm_to_vmem [thread:$0]  (!%p1249_p11), %s269_s28, 256, %s271_s17, %s258_s3, %s1404_s14, %s1404_s14, %s1403_s16  }
  0x46   : > { %282 = sbr.rel (%p1186_p8) target bundleno = 622 (0x26e), region = 40  ;;  %s1263_s15 = sand.u32 (!%p1186_p8), 1, %s1070_s22  }
  0x47   : > { %s1266_s4 = sshll.u32 (!%p1186_p8), %s1263_s15, 4  ;;  %s285_s20 = scalar_lea.sflag (!%p1186_p8), [#allocation3], %s1263_s15 }
  0x48   : > { %s288_s27 = scalar_lea.vmem (!%p1186_p8), [#allocation2], %s1266_s4 }
  0x4b   : > { %1049 = dma.done.wait (%p1176_p4), %s285_s20, 256  }
  0x4c   : > { %1051 = vsyncadd (%p1176_p4), %s285_s20, 4294967040 }
  0x4d   : > { %1053 = dma.done.wait (%p1166_p1), [#allocation6], 1024  }
  0x4e   : > { %1055 = vsyncadd (%p1166_p1), [#allocation6], 4294966272  ;;  %vm337_vm0 = vcmask 261120   ;;  %v333_v0 = vld [vmem:[%s288_s27] sm:$0xff]  ;;  %v334_v1 = vld [vmem:[%s288_s27 + $0x8] sm:$0xff]  ;;  %s322_s17 = scalar_lea.vmem [#allocation8], %s1266_s4 }
  0x4f   : > { %v338_v2 = vsel %vm337_vm0, %v333_v0, 0.0  ;;  %v341_v3 = vsel %vm337_vm0, %v334_v1, 0.0  ;;  %v384_v14 = vld [vmem:[#allocation5 + $0x18] sm:$0xff]  ;;  %v383_v16 = vld [vmem:[#allocation5 + $0x10] sm:$0xff]  ;;  %v382_v18 = vld [vmem:[#allocation5 + $0x8] sm:$0xff]  ;;  %s571_s28 = sshll.u32 %s322_s17, 4  ;;  %s1295_s28 = int_to_ptr.vmem [resolvable:$true] %s571_s28 }
  0x50   : > { %339 = vadd.xlane.f32.xlu0 %v338_v2  ;;  %v472_v15 = vld [vmem:[#allocation7 + $0x18] sm:$0xff]  ;;  %774 = vmatprep.subr.mxu0 %v384_v14  ;;  %v471_v17 = vld [vmem:[#allocation7 + $0x10] sm:$0xff]  ;;  %v470_v19 = vld [vmem:[#allocation7 + $0x8] sm:$0xff]  ;;  %s329_s30 = scalar_lea.vmem [#allocation9], %s1266_s4  ;;  %s760_s11 = sshll.u32 %s1078_s24, 8  ;;  %vm466_vm1 = vcmask 523264  }
  0x51   : > { %785 = vmatprep.subr.mxu1 %v472_v15  ;;  %775 = vmatpush3.msra.mxu0 %v384_v14  ;;  %v381_v20 = vld [vmem:[#allocation5] sm:$0xff]  ;;  %s589_s13 = sshll.u32 %s329_s30, 4  ;;  %s1302_s14 = scalar_lea.hbm %s1387_s5, %s760_s11  ;;  %s1297_s13 = int_to_ptr.vmem [resolvable:$true] %s589_s13 }
  0x52   : > { %786 = vmatpush3.msra.mxu1 %v472_v15  ;;  %776 = vmatprep.subr.mxu0 %v383_v16  ;;  %v469_v21 = vld [vmem:[#allocation7] sm:$0xff]  ;;  %s1307_s20 = scalar_lea.hbm %s1388_s6, %s760_s11  ;;  %s551_s27 = scalar_lea.sflag [#allocation4], %s1263_s15 }
  0x53   : > { %787 = vmatprep.subr.mxu1 %v471_v17  ;;  %777 = vmatpush3.msra.mxu0 %v383_v16  ;;  %v745_v29 = vld [vmem:[%s1383_s1] ss:$0 sm:$0xff]  ;;  %s972_s3 = scalar_lea.vmem %s1295_s28, 256  ;;  %s1093_s29 = smov [#allocation8]  }
  0x54   : > { %342 = vadd.xlane.f32.xlu0 %v341_v3  ;;  %788 = vmatpush3.msra.mxu1 %v471_v17  ;;  %v746_v31 = vld [vmem:[%s1384_s2] ss:$0 sm:$0xff]  ;;  %p973_p1 = scmp.ne.s32.totalorder %s1295_s28, %s972_s3  ;;  %s976_s7 = sshll.u32 %s1093_s29, 4  ;;  %s977_s7 = int_to_ptr.vmem [resolvable:$false] %s976_s7 }
  0x55   : > { %778 = vmatprep.subr.mxu0 %v382_v18  ;;  %789 = vmatprep.subr.mxu1 %v470_v19  ;;  %s978_s9 = scalar_lea.vmem %s977_s7, 512  ;;  %p979_p8 = scmp.lt.s32.totalorder %s1295_s28, %s977_s7 }
  0x56   : > { %779 = vmatpush3.msra.mxu0 %v382_v18  ;;  %790 = vmatpush3.msra.mxu1 %v470_v19  ;;  %p974_p4 = pnand %p973_p1, %p1233_p3  ;;  %p980_p10 = scmp.lt.s32.totalorder %s978_s9, %s972_s3 }
  0x57   : > { %780 = vmatprep.subr.mxu0 %v381_v20  ;;  %791 = vmatprep.subr.mxu1 %v469_v21 }
  0x58   : > { %781 = vmatpush3.msra.mxu0 %v381_v20  ;;  %792 = vmatpush3.msra.mxu1 %v469_v21  ;;  %p975_p6 = pneg %p974_p4  ;;  %p981_p11 = por %p980_p10, %p979_p8 }
  0x5a   : > { %p982_p2 = pnand %p981_p11, %p975_p6 }
  0xd9   : > { %v340_v4 = vpop.xlane.xlu0 %339 }
  0xda   : > { %v345_v5 = vmul.f32 0.03125, %v340_v4 }
  0xdc   : > { %v347_v6 = vsub.f32 %v333_v0, %v345_v5 }
  0xdd   : > { %v343_v7 = vpop.xlane.xlu0 %342 }
  0xde   : > { %v346_v8 = vmul.f32 0.03125, %v343_v7  ;;  %v349_v9 = vmul.f32 %v347_v6, %v347_v6 }
  0xe0   : > { %v348_v10 = vsub.f32 %v334_v1, %v346_v8  ;;  %v351_v11 = vsel %vm337_vm0, %v349_v9, 0.0 }
  0xe1   : > { %352 = vadd.xlane.f32.xlu1 %v351_v11 }
  0xe2   : > { %v350_v12 = vmul.f32 %v348_v10, %v348_v10 }
  0xe4   : > { %v354_v13 = vsel %vm337_vm0, %v350_v12, 0.0 }
  0xe5   : > { %355 = vadd.xlane.f32.xlu1 %v354_v13 }
 0x16a   : > { %v353_v22 = vpop.xlane.xlu1 %352 }
 0x16b   : > { %v357_v23 = vmul.f32 0.03125, %v353_v22 }
 0x16d   : > { %v359_v24 = vadd.f32 1e-05, %v357_v23 }
 0x16e   : > { %v356_v25 = vpop.xlane.xlu1 %355 }
 0x16f   : > { %888 = vrsqrt.f32 %v359_v24  ;;  %v358_v26 = vmul.f32 0.03125, %v356_v25 }
 0x171   : > { %v360_v27 = vadd.f32 1e-05, %v358_v26 }
 0x173   : > { %890 = vrsqrt.f32 %v360_v27 }
 0x17c   : > { %v889_v28 = vpop.eup %888 }
 0x17d   : > { %v363_v30 = vmul.f32 %v889_v28, %v347_v6 }
 0x17f   : > { %v371_v32 = vmul.f32 %v745_v29, %v363_v30 }
 0x180   : > { %v891_v33 = vpop.eup %890 }
 0x181   : > { %v364_v34 = vmul.f32 %v891_v33, %v348_v10  ;;  %v379_v35 = vadd.f32 %v746_v31, %v371_v32 }
 0x183   : > { %v372_v36 = vmul.f32 %v745_v29, %v364_v34  ;;  %782 = vmatprep.mubr.msk.f32.mxu0 %vm337_vm0, %v379_v35  ;;  %793 = vmatprep.mubr.msk.f32.mxu1 %vm337_vm0, %v379_v35 }
 0x185   : > { %v380_v37 = vadd.f32 %v746_v31, %v372_v36 }
 0x187   : > { %783 = vmatmul.mubr.msk.f32.vlgmr.msra.gmra.mxu0 %vm337_vm0, %v380_v37  ;;  %794 = vmatmul.mubr.msk.f32.vlgmr.msra.gmra.mxu1 %vm337_vm0, %v380_v37 }
 0x247   : > { %v784_v38 = vpop.f32.mrf.mxu0  ;;  %v795_v39 = vpop.f32.mrf.mxu1 }
 0x248   : > { %468 = vst.msk [vmem:[%s322_s17 + $0x8] sm:$0xff] %vm466_vm1, %v784_v38  ;;  %549 = vst.msk [vmem:[%s329_s30 + $0x8] sm:$0xff] %vm466_vm1, %v795_v39 }
 0x249   : > { %v457_v40 = vpop.f32.mrf.mxu0  ;;  %v539_v41 = vpop.f32.mrf.mxu1 }
 0x24a   : > { %467 = vst.msk [vmem:[%s322_s17] sm:$0xff] %vm466_vm1, %v457_v40  ;;  %548 = vst.msk [vmem:[%s329_s30] sm:$0xff] %vm466_vm1, %v539_v41 }
 0x24b   : > { %985 = shalt.err (!%p982_p2)
}
 0x24c   : > { %s986_s17 = scalar_lea.hbm %s1302_s14, 256  ;;  %s990_s18 = scalar_lea.hbm %s1387_s5, 512 }
 0x24d   : > { %p987_p9 = scmp.ne.s32.totalorder %s1302_s14, %s986_s17  ;;  %p991_p0 = scmp.lt.s32.totalorder %s1302_s14, %s1387_s5 }
 0x24e   : > { %p992_p7 = scmp.lt.s32.totalorder %s990_s18, %s986_s17 }
 0x24f   : > { %p988_p12 = pnand %p987_p9, %p1233_p3 }
 0x250   : > { %p993_p5 = por %p992_p7, %p991_p0 }
 0x251   : > { %p989_p13 = pneg %p988_p12 }
 0x253   : > { %p994_p1 = pnand %p993_p5, %p989_p13 }
 0x255   : > { %997 = shalt.err (!%p994_p1)
}
 0x256   : > { %s1094_s4 = smov 128   ;;  %s1095_s3 = smov 8  }
 0x257   : > { %806 = dma.vmem_to_hbm [thread:$0]  (%p1233_p3), %s1295_s28, 256, %s1302_s14, %s551_s27, %s1094_s4, %s1094_s4, %s1095_s3  }
 0x258   : > { %s556_s29 = scalar_lea.sflag [#allocation10], %s1263_s15  ;;  %s998_s7 = scalar_lea.vmem %s1297_s13, 256 }
 0x259   : > { %p999_p4 = scmp.ne.s32.totalorder %s1297_s13, %s998_s7  ;;  %s1096_s9 = smov [#allocation9]  }
 0x25a   : > { %s1002_s17 = sshll.u32 %s1096_s9, 4  ;;  %s1003_s17 = int_to_ptr.vmem [resolvable:$false] %s1002_s17 }
 0x25b   : > { %p1000_p6 = pnand %p999_p4, %p1233_p3  ;;  %s1004_s30 = scalar_lea.vmem %s1003_s17, 512 }
 0x25c   : > { %p1005_p10 = scmp.lt.s32.totalorder %s1297_s13, %s1003_s17  ;;  %p1006_p11 = scmp.lt.s32.totalorder %s1004_s30, %s998_s7 }
 0x25d   : > { %p1001_p8 = pneg %p1000_p6 }
 0x25e   : > { %p1007_p2 = por %p1006_p11, %p1005_p10 }
 0x260   : > { %p1008_p9 = pnand %p1007_p2, %p1001_p8 }
 0x262   : > { %1011 = shalt.err (!%p1008_p9)
}
 0x263   : > { %s1012_s28 = scalar_lea.hbm %s1307_s20, 256  ;;  %s1016_s27 = scalar_lea.hbm %s1388_s6, 512 }
 0x264   : > { %p1013_p12 = scmp.ne.s32.totalorder %s1307_s20, %s1012_s28  ;;  %p1017_p7 = scmp.lt.s32.totalorder %s1307_s20, %s1388_s6 }
 0x265   : > { %p1018_p5 = scmp.lt.s32.totalorder %s1016_s27, %s1012_s28 }
 0x266   : > { %p1014_p13 = pnand %p1013_p12, %p1233_p3 }
 0x267   : > { %p1019_p1 = por %p1018_p5, %p1017_p7 }
 0x268   : > { %p1015_p0 = pneg %p1014_p13 }
 0x26a   : > { %p1020_p4 = pnand %p1019_p1, %p1015_p0 }
 0x26c   : > { %1023 = shalt.err (!%p1020_p4)
}
 0x26d   : > { %807 = dma.vmem_to_hbm [thread:$0]  (%p1233_p3), %s1297_s13, 256, %s1307_s20, %s556_s29, %s1094_s4, %s1094_s4, %s1095_s3  }
 0x26e PF: > { %s604_s16 = sand.u32 1, %s1066_s21   ;;  %p1405_p6 = scmp.ne.s32.totalorder %s1396_s8, 0 }
 0x26f   : > { %p1406_p8 = scmp.ge.s32.totalorder %s1086_s26, 2  ;;  %s605_s24 = scalar_lea.sflag [#allocation4], %s604_s16 }
 0x271   : > { %p822_p10 = pnand %p1406_p8, %p1405_p6 }
 0x273   : > { %p823_p11 = pneg %p822_p10 }
 0x275   : > { %1057 = dma.done.wait (%p823_p11), %s605_s24, 256  }
 0x276   : > { %1059 = vsyncadd (%p823_p11), %s605_s24, 4294967040  ;;  %s614_s7 = scalar_lea.sflag [#allocation10], %s604_s16 }
 0x277   : > { %1061 = dma.done.wait (%p823_p11), %s614_s7, 256  }
 0x278   : > { %1063 = vsyncadd (%p823_p11), %s614_s7, 4294967040  ;;  %s27_s26 = sadd.s32 1, %s1086_s26   ;;  %s1407_s21 = smov %s1070_s22 }
 0x279   : > { %p24_p2 = scmp.ge.s32.totalorder %s27_s26, 4   ;;  %s1408_s22 = smov %s1074_s23 }
 0x27a   : > { %s1409_s23 = smov %s1242_s19  ;;  %s1410_s24 = smov %s1082_s25 }
 0x27b   : > { %s1411_s25 = smov %s1413_s10  ;;  %26 = sbr.rel (!%p24_p2) target bundleno = 12 (0xc), region = 110 }
 0x280   :  { %619 = vsyncpa [#allocation3], 1 }
 0x281   :  { %621 = vsyncpa [#allocation3 + $0x1], 1 }
 0x282   :  { %622 = vsyncpa [#allocation6], 1 }
 0x283   :  { %623 = vsyncpa [#allocation4], 1 }
 0x284   :  { %625 = vsyncpa [#allocation4 + $0x1], 1 }
 0x285   :  { %626 = vsyncpa [#allocation10], 1 }
 0x286   :  { %628 = vsyncpa [#allocation10 + $0x1], 1 }

</bundles_post_ra>
